<compile_context>
chip_gen: v7x
topology: tpu7x:2x2x1
jax: 0.10.0
libtpu: 0.0.40
codegen_flags: <defaults>
</compile_context>

<pallas_src>
import math
from functools import partial

import jax
import jax.numpy as jnp
from jax import lax
from jax.experimental import pallas as pl
from jax.experimental.pallas import tpu as pltpu


def _attention_kernel(x_ref, wqkv_ref, bqkv_ref, wo_ref, bo_ref,
                      out_ref, *rest, scale, seq_len, h_blk, vis):
    """One (batch, head_block) grid step of multi-head self-attention.

    x_ref:     (1, S_p, D)                input hidden states (compute dtype)
    wqkv_ref:  (num_hb, D, 3*blkw)        fused QKV weight, fully VMEM-resident
    bqkv_ref:  (num_hb, 1, 3*blkw) f32    fused QKV bias, resident
    wo_ref:    (num_hb, blkw, D)          output projection weight, resident
    bo_ref:    (1, D) f32                 output projection bias, resident
    out_ref:   (1, S_p, D)                attention output (resident across hb)
    probs_ref: (1, h_blk, S_p, S_p)       softmax probs (only when vis=True)
    ctx_ref:   (num_hb, S_p, blkw)        bf16 per-head-block context scratch
    """
    if vis:
        probs_ref, ctx_ref = rest
    else:
        (ctx_ref,) = rest

    hb = pl.program_id(1)
    num_hb = wo_ref.shape[0]          # static
    blkw = ctx_ref.shape[-1]          # static: h_blk * head_dim
    dh = blkw // h_blk

    x = x_ref[0]                      # (S_p, D), compute dtype
    s_pad = x.shape[0]
    cdt = x.dtype

    # Fused QKV projection for this head block (bf16 MXU, f32 accumulation).
    w_blk = wqkv_ref[hb]              # (D, 3*blkw)
    b_blk = bqkv_ref[hb]              # (1, 3*blkw) f32
    qkv = jnp.dot(x, w_blk, preferred_element_type=jnp.float32) + b_blk

    # Fold 1/sqrt(head_dim) into q in f32, then cast q/k/v to bf16 for the MXU.
    q_all = (qkv[:, :blkw] * jnp.float32(scale)).astype(cdt)
    k_all = qkv[:, blkw:2 * blkw].astype(cdt)
    v_all = qkv[:, 2 * blkw:].astype(cdt)

    mask_needed = seq_len != s_pad
    if mask_needed:
        key_valid = lax.broadcasted_iota(jnp.int32, (1, s_pad), 1) < seq_len

    ctx_parts = []
    for i in range(h_blk):
        sl = slice(i * dh, (i + 1) * dh)
        q = q_all[:, sl]
        k = k_all[:, sl]
        v = v_all[:, sl]

        # Scores: contract the head dim of q and k directly (no K transpose),
        # bf16 inputs with f32 accumulation.
        scores = lax.dot_general(
            q, k, dimension_numbers=(((1,), (1,)), ((), ())),
            preferred_element_type=jnp.float32)          # (S_p, S_p) f32

        if mask_needed:
            scores = jnp.where(key_valid, scores, jnp.float32(-1e30))

        # Numerically-stable softmax; reciprocal on the EUP.
        scores = scores - jnp.max(scores, axis=-1, keepdims=True)
        exp_s = jnp.exp(scores)
        denom = jnp.sum(exp_s, axis=-1, keepdims=True)
        probs = (exp_s * pl.reciprocal(denom, approx=True)).astype(cdt)

        if vis:
            probs_ref[0, i] = probs

        ctx = jnp.dot(probs, v, preferred_element_type=jnp.float32)  # (S_p, dh)
        ctx_parts.append(ctx.astype(cdt))

    ctx_blk = ctx_parts[0] if h_blk == 1 else jnp.concatenate(ctx_parts, axis=-1)
    ctx_ref[hb] = ctx_blk             # (S_p, blkw) bf16, one store per step

    # Deferred output projection: one pass with K = blkw per head block at the
    # last step (K is 128/256-wide instead of head_dim-wide), f32 accumulation.
    @pl.when(hb == pl.num_programs(1) - 1)
    def _():
        acc = jnp.dot(ctx_ref[0], wo_ref[0], preferred_element_type=jnp.float32)
        for j in range(1, num_hb):
            acc = acc + jnp.dot(ctx_ref[j], wo_ref[j],
                                preferred_element_type=jnp.float32)
        acc = acc + bo_ref[...]
        out_ref[0] = acc.astype(out_ref.dtype)


def attention_forward(x, params, *, num_heads, vis=True,
                      compute_dtype=jnp.bfloat16):
    """x: (B, S, D). params: dict of wq,bq,wk,bk,wv,bv,wo,bo.

    Returns (attention_output, attention_probs) with probs=None when vis=False,
    mirroring the PyTorch module's forward.
    """
    B, S, D = x.shape
    dh = D // num_heads
    assert num_heads * dh == D, "hidden_size must be divisible by num_heads"

    # Head blocking: largest divisor of num_heads with h_blk*dh <= 256, so the
    # per-step projection tiles are ~256 lanes wide (full v6e/v7x MXU).
    target_heads = max(1, 256 // max(dh, 1))
    h_blk = 1
    for cand in range(1, num_heads + 1):
        if num_heads % cand == 0 and cand <= target_heads:
            h_blk = cand
    num_hb = num_heads // h_blk
    blkw = h_blk * dh

    # Pad S for lane/sublane-friendly tiles (128 for long sequences, 16 for
    # short bf16 ones — bf16 packs 16 rows per sublane tile).
    seq_mult = 128 if S >= 128 else 16
    s_pad = -(-S // seq_mult) * seq_mult

    orig_dtype = x.dtype
    xc = x.astype(compute_dtype)
    if s_pad != S:
        xc = jnp.pad(xc, ((0, 0), (0, s_pad - S), (0, 0)))

    # Host-side weight packing: fused QKV weight grouped by head block.
    def pack_w(w):                    # (D, D) -> (D, num_hb, blkw)
        return w.astype(compute_dtype).reshape(D, num_hb, blkw)

    w_qkv = jnp.concatenate(
        [pack_w(params["wq"]), pack_w(params["wk"]), pack_w(params["wv"])],
        axis=-1)                                        # (D, num_hb, 3*blkw)
    w_qkv = jnp.transpose(w_qkv, (1, 0, 2))             # (num_hb, D, 3*blkw)

    def pack_b(b):                    # (D,) -> (num_hb, 1, blkw)
        return b.astype(jnp.float32).reshape(num_hb, 1, blkw)

    b_qkv = jnp.concatenate(
        [pack_b(params["bq"]), pack_b(params["bk"]), pack_b(params["bv"])],
        axis=-1)                                        # (num_hb, 1, 3*blkw)

    w_o = params["wo"].astype(compute_dtype).reshape(num_hb, blkw, D)
    b_o = params["bo"].astype(jnp.float32).reshape(1, D)

    kernel = partial(_attention_kernel, scale=1.0 / math.sqrt(dh),
                     seq_len=S, h_blk=h_blk, vis=vis)

    in_specs = [
        pl.BlockSpec((1, s_pad, D), lambda b, hb: (b, 0, 0)),        # x
        pl.BlockSpec((num_hb, D, 3 * blkw), lambda b, hb: (0, 0, 0)),  # w_qkv (resident)
        pl.BlockSpec((num_hb, 1, 3 * blkw), lambda b, hb: (0, 0, 0)),  # b_qkv (resident)
        pl.BlockSpec((num_hb, blkw, D), lambda b, hb: (0, 0, 0)),      # w_o (resident)
        pl.BlockSpec((1, D), lambda b, hb: (0, 0)),                    # b_o (resident)
    ]

    out_shapes = [jax.ShapeDtypeStruct((B, s_pad, D), orig_dtype)]
    out_specs = [pl.BlockSpec((1, s_pad, D), lambda b, hb: (b, 0, 0))]
    if vis:
        out_shapes.append(
            jax.ShapeDtypeStruct((B, num_heads, s_pad, s_pad), compute_dtype))
        out_specs.append(
            pl.BlockSpec((1, h_blk, s_pad, s_pad), lambda b, hb: (b, hb, 0, 0)))

    results = pl.pallas_call(
        kernel,
        out_shape=tuple(out_shapes),
        grid_spec=pltpu.PrefetchScalarGridSpec(
            num_scalar_prefetch=0,
            grid=(B, num_hb),
            in_specs=in_specs,
            out_specs=tuple(out_specs),
            scratch_shapes=[pltpu.VMEM((num_hb, s_pad, blkw), compute_dtype)],
        ),
        compiler_params=pltpu.CompilerParams(
            dimension_semantics=("parallel", "arbitrary"),
            vmem_limit_bytes=48 * 1024 * 1024),
    )(xc, w_qkv, b_qkv, w_o, b_o)

    if vis:
        out, probs = results
    else:
        out = results[0] if isinstance(results, (tuple, list)) else results
        probs = None

    if s_pad != S:
        out = out[:, :S, :]
        if probs is not None:
            probs = probs[:, :, :S, :S]
    if probs is not None:
        probs = probs.astype(orig_dtype)
    return out, probs


def _reference_attention(x, params, *, num_heads, compute_dtype=jnp.bfloat16):
    """Pure-JAX f32 reference on the same bf16-quantized weights/activations."""
    B, S, D = x.shape
    dh = D // num_heads
    xf = x.astype(compute_dtype).astype(jnp.float32)

    def w(name):
        return params[name].astype(compute_dtype).astype(jnp.float32)

    def proj(wn, bn):
        return xf @ w(wn) + params[bn]

    q = proj("wq", "bq").reshape(B, S, num_heads, dh).transpose(0, 2, 1, 3)
    k = proj("wk", "bk").reshape(B, S, num_heads, dh).transpose(0, 2, 1, 3)
    v = proj("wv", "bv").reshape(B, S, num_heads, dh).transpose(0, 2, 1, 3)

    scores = jnp.einsum("bhqd,bhkd->bhqk", q, k) / math.sqrt(dh)
    probs = jax.nn.softmax(scores, axis=-1)
    ctx = jnp.einsum("bhqk,bhkd->bhqd", probs, v)
    ctx = ctx.transpose(0, 2, 1, 3).reshape(B, S, D)
    out = ctx @ w("wo") + params["bo"]
    return out, probs


def init_params(key, hidden_size):
    ks = jax.random.split(key, 8)
    D = hidden_size
    scale = 1.0 / math.sqrt(D)
    return {
        "wq": jax.random.normal(ks[0], (D, D), jnp.float32) * scale,
        "bq": jax.random.normal(ks[1], (D,), jnp.float32) * 0.01,
        "wk": jax.random.normal(ks[2], (D, D), jnp.float32) * scale,
        "bk": jax.random.normal(ks[3], (D,), jnp.float32) * 0.01,
        "wv": jax.random.normal(ks[4], (D, D), jnp.float32) * scale,
        "bv": jax.random.normal(ks[5], (D,), jnp.float32) * 0.01,
        "wo": jax.random.normal(ks[6], (D, D), jnp.float32) * scale,
        "bo": jax.random.normal(ks[7], (D,), jnp.float32) * 0.01,
    }


def _check_case(x, params, num_heads):
    out, probs = attention_forward(x, params, num_heads=num_heads, vis=True)
    out = jax.block_until_ready(out)
    probs = jax.block_until_ready(probs)

    ref_out, ref_probs = _reference_attention(x, params, num_heads=num_heads)

    assert out.shape == ref_out.shape
    assert probs.shape == ref_probs.shape
    assert jnp.allclose(out, ref_out, atol=5e-2, rtol=5e-2), \
        float(jnp.max(jnp.abs(out - ref_out)))
    assert jnp.allclose(probs, ref_probs, atol=3e-2, rtol=3e-2), \
        float(jnp.max(jnp.abs(probs - ref_probs)))
    # softmax rows must sum to ~1 over real keys (probs are bf16 in-kernel)
    assert jnp.allclose(jnp.sum(probs, axis=-1), 1.0, atol=2e-2)
    return out


if __name__ == "__main__":
    # TODO(synk): dropout (attention_dropout_rate=0.0 default) is the identity
    # and therefore omitted.
    key = jax.random.PRNGKey(0)
    k1, k2, kp = jax.random.split(key, 3)

    # Case 1: small shapes consistent with the module (hidden % heads == 0).
    B, S, D, H = 2, 8, 32, 4
    x1 = jax.random.normal(k1, (B, S, D), jnp.float32)
    params = init_params(kp, D)
    out_vis = _check_case(x1, params, H)

    # Case 2: non-multiple-of-16 sequence length exercises padding + key mask.
    x2 = jax.random.normal(k2, (1, 12, D), jnp.float32)
    _check_case(x2, params, H)

    # Case 3: vis=False path (no attention-probs writeback).
    out_novis, weights = attention_forward(x1, params, num_heads=H, vis=False)
    out_novis = jax.block_until_ready(out_novis)
    assert weights is None
    assert jnp.allclose(out_novis, out_vis, atol=1e-3, rtol=1e-3)

    print("KERNEL_OK")
</pallas_src>

<mosaic_0001>
module attributes {stable_mosaic.version = 11 : i64} {
  func.func @_attention_kernel(%arg0: i32, %arg1: i32, %arg2: memref<1x16x32xbf16, #tpu.memory_space<vmem>>, %arg3: memref<1x32x96xbf16, #tpu.memory_space<vmem>>, %arg4: memref<1x1x96xf32, #tpu.memory_space<vmem>>, %arg5: memref<1x32x32xbf16, #tpu.memory_space<vmem>>, %arg6: memref<1x32xf32, #tpu.memory_space<vmem>>, %arg7: memref<1x16x32xf32, #tpu.memory_space<vmem>>, %arg8: memref<1x4x16x16xbf16, #tpu.memory_space<vmem>>, %arg9: memref<1x16x32xbf16, #tpu.memory_space<vmem>>) attributes {dimension_semantics = [#tpu.dimension_semantics<parallel>, #tpu.dimension_semantics<arbitrary>], iteration_bounds = array<i64: 2, 1>, scalar_prefetch = 0 : i64, scratch_operands = 1 : i64, tpu.core_type = #tpu.core_type<tc>, window_params = [{transform_indices = @transform_0, window_bounds = array<i64: 1, 16, 32>}, {pipeline_mode = #tpu.pipeline_mode<synchronous>, transform_indices = @transform_1, window_bounds = array<i64: 1, 32, 96>}, {pipeline_mode = #tpu.pipeline_mode<synchronous>, transform_indices = @transform_2, window_bounds = array<i64: 1, 1, 96>}, {pipeline_mode = #tpu.pipeline_mode<synchronous>, transform_indices = @transform_3, window_bounds = array<i64: 1, 32, 32>}, {pipeline_mode = #tpu.pipeline_mode<synchronous>, transform_indices = @transform_4, window_bounds = array<i64: 1, 32>}, {transform_indices = @transform_5, window_bounds = array<i64: 1, 16, 32>}, {transform_indices = @transform_6, window_bounds = array<i64: 1, 4, 16, 16>}]} {
    %c0 = arith.constant 0 : index
    %c0_0 = arith.constant 0 : index
    %c0_1 = arith.constant 0 : index
    %0 = vector.load %arg2[%c0, %c0_0, %c0_1] : memref<1x16x32xbf16, #tpu.memory_space<vmem>>, vector<1x16x32xbf16>
    %1 = vector.shape_cast %0 : vector<1x16x32xbf16> to vector<16x32xbf16>
    %2 = arith.index_cast %arg1 : i32 to index
    %c0_2 = arith.constant 0 : index
    %c0_3 = arith.constant 0 : index
    %3 = vector.load %arg3[%2, %c0_2, %c0_3] : memref<1x32x96xbf16, #tpu.memory_space<vmem>>, vector<1x32x96xbf16>
    %4 = vector.shape_cast %3 : vector<1x32x96xbf16> to vector<32x96xbf16>
    %5 = arith.index_cast %arg1 : i32 to index
    %c0_4 = arith.constant 0 : index
    %c0_5 = arith.constant 0 : index
    %6 = vector.load %arg4[%5, %c0_4, %c0_5] : memref<1x1x96xf32, #tpu.memory_space<vmem>>, vector<1x1x96xf32>
    %7 = vector.shape_cast %6 : vector<1x1x96xf32> to vector<1x96xf32>
    %cst = arith.constant dense<0.000000e+00> : vector<16x96xf32>
    %8 = tpu.matmul %1, %4, %cst {dimension_numbers = #tpu.dot_dimension_numbers<[1], [0], [0], [1], [0, 0, 1, 1], [], []>} : vector<16x32xbf16>, vector<32x96xbf16>, vector<16x96xf32> -> vector<16x96xf32>
    %9 = vector.broadcast %7 : vector<1x96xf32> to vector<16x96xf32>
    %10 = arith.addf %8, %9 : vector<16x96xf32>
    %11 = vector.extract_strided_slice %10 {offsets = [0, 0], sizes = [16, 32], strides = [1, 1]} : vector<16x96xf32> to vector<16x32xf32>
    %cst_6 = arith.constant 0.353553385 : f32
    %12 = vector.broadcast %cst_6 : f32 to vector<16x32xf32>
    %13 = arith.mulf %11, %12 : vector<16x32xf32>
    %14 = arith.truncf %13 : vector<16x32xf32> to vector<16x32xbf16>
    %15 = vector.extract_strided_slice %10 {offsets = [0, 32], sizes = [16, 32], strides = [1, 1]} : vector<16x96xf32> to vector<16x32xf32>
    %16 = arith.truncf %15 : vector<16x32xf32> to vector<16x32xbf16>
    %17 = vector.extract_strided_slice %10 {offsets = [0, 64], sizes = [16, 32], strides = [1, 1]} : vector<16x96xf32> to vector<16x32xf32>
    %18 = arith.truncf %17 : vector<16x32xf32> to vector<16x32xbf16>
    %19 = tpu.iota {dimensions = array<i32: 1>} : vector<1x16xi32>
    %c8_i32 = arith.constant 8 : i32
    %20 = vector.broadcast %c8_i32 : i32 to vector<1x16xi32>
    %21 = arith.cmpi slt, %19, %20 : vector<1x16xi32>
    %22 = vector.extract_strided_slice %14 {offsets = [0, 0], sizes = [16, 8], strides = [1, 1]} : vector<16x32xbf16> to vector<16x8xbf16>
    %23 = vector.extract_strided_slice %16 {offsets = [0, 0], sizes = [16, 8], strides = [1, 1]} : vector<16x32xbf16> to vector<16x8xbf16>
    %24 = vector.extract_strided_slice %18 {offsets = [0, 0], sizes = [16, 8], strides = [1, 1]} : vector<16x32xbf16> to vector<16x8xbf16>
    %cst_7 = arith.constant dense<0.000000e+00> : vector<16x16xf32>
    %25 = tpu.matmul %22, %23, %cst_7 {dimension_numbers = #tpu.dot_dimension_numbers<[1], [1], [0], [0], [0, 0, 1, 0], [], []>} : vector<16x8xbf16>, vector<16x8xbf16>, vector<16x16xf32> -> vector<16x16xf32>
    %cst_8 = arith.constant -1.000000e+30 : f32
    %26 = vector.shape_cast %21 : vector<1x16xi1> to vector<1x16xi1>
    %27 = vector.broadcast %26 : vector<1x16xi1> to vector<16x16xi1>
    %28 = vector.broadcast %cst_8 : f32 to vector<16x16xf32>
    %29 = arith.select %27, %25, %28 : vector<16x16xi1>, vector<16x16xf32>
    %cst_9 = arith.constant dense<0xFF800000> : vector<16xf32>
    %30 = vector.multi_reduction <maximumf>, %29, %cst_9 [1] : vector<16x16xf32> to vector<16xf32>
    %31 = vector.shape_cast %30 : vector<16xf32> to vector<16x1xf32>
    %32 = vector.broadcast %31 : vector<16x1xf32> to vector<16x16xf32>
    %33 = arith.subf %29, %32 : vector<16x16xf32>
    %34 = math.exp %33 : vector<16x16xf32>
    %cst_10 = arith.constant dense<0.000000e+00> : vector<16xf32>
    %35 = vector.multi_reduction <add>, %34, %cst_10 [1] : vector<16x16xf32> to vector<16xf32>
    %36 = vector.shape_cast %35 : vector<16xf32> to vector<16x1xf32>
    %37 = tpu.reciprocal %36 {approx = true} : vector<16x1xf32> -> vector<16x1xf32>
    %38 = vector.broadcast %37 : vector<16x1xf32> to vector<16x16xf32>
    %39 = arith.mulf %34, %38 : vector<16x16xf32>
    %40 = arith.truncf %39 : vector<16x16xf32> to vector<16x16xbf16>
    %c0_11 = arith.constant 0 : index
    %c0_12 = arith.constant 0 : index
    %c0_13 = arith.constant 0 : index
    %c0_14 = arith.constant 0 : index
    %41 = vector.load %arg8[%c0_11, %c0_12, %c0_13, %c0_14] : memref<1x4x16x16xbf16, #tpu.memory_space<vmem>>, vector<1x1x16x16xbf16>
    %42 = vector.shape_cast %41 : vector<1x1x16x16xbf16> to vector<16x16xbf16>
    %43 = vector.shape_cast %40 : vector<16x16xbf16> to vector<1x1x16x16xbf16>
    tpu.vector_store %arg8[%c0_11, %c0_12, %c0_13, %c0_14], %43 {strides = array<i32>} : memref<1x4x16x16xbf16, #tpu.memory_space<vmem>>, vector<1x1x16x16xbf16>,
    %cst_15 = arith.constant dense<0.000000e+00> : vector<16x8xf32>
    %44 = tpu.matmul %40, %24, %cst_15 {dimension_numbers = #tpu.dot_dimension_numbers<[1], [0], [0], [1], [0, 0, 1, 1], [], []>} : vector<16x16xbf16>, vector<16x8xbf16>, vector<16x8xf32> -> vector<16x8xf32>
    %45 = arith.truncf %44 : vector<16x8xf32> to vector<16x8xbf16>
    %46 = vector.extract_strided_slice %14 {offsets = [0, 8], sizes = [16, 8], strides = [1, 1]} : vector<16x32xbf16> to vector<16x8xbf16>
    %47 = vector.extract_strided_slice %16 {offsets = [0, 8], sizes = [16, 8], strides = [1, 1]} : vector<16x32xbf16> to vector<16x8xbf16>
    %48 = vector.extract_strided_slice %18 {offsets = [0, 8], sizes = [16, 8], strides = [1, 1]} : vector<16x32xbf16> to vector<16x8xbf16>
    %cst_16 = arith.constant dense<0.000000e+00> : vector<16x16xf32>
    %49 = tpu.matmul %46, %47, %cst_16 {dimension_numbers = #tpu.dot_dimension_numbers<[1], [1], [0], [0], [0, 0, 1, 0], [], []>} : vector<16x8xbf16>, vector<16x8xbf16>, vector<16x16xf32> -> vector<16x16xf32>
    %cst_17 = arith.constant -1.000000e+30 : f32
    %50 = vector.shape_cast %21 : vector<1x16xi1> to vector<1x16xi1>
    %51 = vector.broadcast %50 : vector<1x16xi1> to vector<16x16xi1>
    %52 = vector.broadcast %cst_17 : f32 to vector<16x16xf32>
    %53 = arith.select %51, %49, %52 : vector<16x16xi1>, vector<16x16xf32>
    %cst_18 = arith.constant dense<0xFF800000> : vector<16xf32>
    %54 = vector.multi_reduction <maximumf>, %53, %cst_18 [1] : vector<16x16xf32> to vector<16xf32>
    %55 = vector.shape_cast %54 : vector<16xf32> to vector<16x1xf32>
    %56 = vector.broadcast %55 : vector<16x1xf32> to vector<16x16xf32>
    %57 = arith.subf %53, %56 : vector<16x16xf32>
    %58 = math.exp %57 : vector<16x16xf32>
    %cst_19 = arith.constant dense<0.000000e+00> : vector<16xf32>
    %59 = vector.multi_reduction <add>, %58, %cst_19 [1] : vector<16x16xf32> to vector<16xf32>
    %60 = vector.shape_cast %59 : vector<16xf32> to vector<16x1xf32>
    %61 = tpu.reciprocal %60 {approx = true} : vector<16x1xf32> -> vector<16x1xf32>
    %62 = vector.broadcast %61 : vector<16x1xf32> to vector<16x16xf32>
    %63 = arith.mulf %58, %62 : vector<16x16xf32>
    %64 = arith.truncf %63 : vector<16x16xf32> to vector<16x16xbf16>
    %c0_20 = arith.constant 0 : index
    %c1 = arith.constant 1 : index
    %c0_21 = arith.constant 0 : index
    %c0_22 = arith.constant 0 : index
    %65 = vector.load %arg8[%c0_20, %c1, %c0_21, %c0_22] : memref<1x4x16x16xbf16, #tpu.memory_space<vmem>>, vector<1x1x16x16xbf16>
    %66 = vector.shape_cast %65 : vector<1x1x16x16xbf16> to vector<16x16xbf16>
    %67 = vector.shape_cast %64 : vector<16x16xbf16> to vector<1x1x16x16xbf16>
    tpu.vector_store %arg8[%c0_20, %c1, %c0_21, %c0_22], %67 {strides = array<i32>} : memref<1x4x16x16xbf16, #tpu.memory_space<vmem>>, vector<1x1x16x16xbf16>,
    %cst_23 = arith.constant dense<0.000000e+00> : vector<16x8xf32>
    %68 = tpu.matmul %64, %48, %cst_23 {dimension_numbers = #tpu.dot_dimension_numbers<[1], [0], [0], [1], [0, 0, 1, 1], [], []>} : vector<16x16xbf16>, vector<16x8xbf16>, vector<16x8xf32> -> vector<16x8xf32>
    %69 = arith.truncf %68 : vector<16x8xf32> to vector<16x8xbf16>
    %70 = vector.extract_strided_slice %14 {offsets = [0, 16], sizes = [16, 8], strides = [1, 1]} : vector<16x32xbf16> to vector<16x8xbf16>
    %71 = vector.extract_strided_slice %16 {offsets = [0, 16], sizes = [16, 8], strides = [1, 1]} : vector<16x32xbf16> to vector<16x8xbf16>
    %72 = vector.extract_strided_slice %18 {offsets = [0, 16], sizes = [16, 8], strides = [1, 1]} : vector<16x32xbf16> to vector<16x8xbf16>
    %cst_24 = arith.constant dense<0.000000e+00> : vector<16x16xf32>
    %73 = tpu.matmul %70, %71, %cst_24 {dimension_numbers = #tpu.dot_dimension_numbers<[1], [1], [0], [0], [0, 0, 1, 0], [], []>} : vector<16x8xbf16>, vector<16x8xbf16>, vector<16x16xf32> -> vector<16x16xf32>
    %cst_25 = arith.constant -1.000000e+30 : f32
    %74 = vector.shape_cast %21 : vector<1x16xi1> to vector<1x16xi1>
    %75 = vector.broadcast %74 : vector<1x16xi1> to vector<16x16xi1>
    %76 = vector.broadcast %cst_25 : f32 to vector<16x16xf32>
    %77 = arith.select %75, %73, %76 : vector<16x16xi1>, vector<16x16xf32>
    %cst_26 = arith.constant dense<0xFF800000> : vector<16xf32>
    %78 = vector.multi_reduction <maximumf>, %77, %cst_26 [1] : vector<16x16xf32> to vector<16xf32>
    %79 = vector.shape_cast %78 : vector<16xf32> to vector<16x1xf32>
    %80 = vector.broadcast %79 : vector<16x1xf32> to vector<16x16xf32>
    %81 = arith.subf %77, %80 : vector<16x16xf32>
    %82 = math.exp %81 : vector<16x16xf32>
    %cst_27 = arith.constant dense<0.000000e+00> : vector<16xf32>
    %83 = vector.multi_reduction <add>, %82, %cst_27 [1] : vector<16x16xf32> to vector<16xf32>
    %84 = vector.shape_cast %83 : vector<16xf32> to vector<16x1xf32>
    %85 = tpu.reciprocal %84 {approx = true} : vector<16x1xf32> -> vector<16x1xf32>
    %86 = vector.broadcast %85 : vector<16x1xf32> to vector<16x16xf32>
    %87 = arith.mulf %82, %86 : vector<16x16xf32>
    %88 = arith.truncf %87 : vector<16x16xf32> to vector<16x16xbf16>
    %c0_28 = arith.constant 0 : index
    %c2 = arith.constant 2 : index
    %c0_29 = arith.constant 0 : index
    %c0_30 = arith.constant 0 : index
    %89 = vector.load %arg8[%c0_28, %c2, %c0_29, %c0_30] : memref<1x4x16x16xbf16, #tpu.memory_space<vmem>>, vector<1x1x16x16xbf16>
    %90 = vector.shape_cast %89 : vector<1x1x16x16xbf16> to vector<16x16xbf16>
    %91 = vector.shape_cast %88 : vector<16x16xbf16> to vector<1x1x16x16xbf16>
    tpu.vector_store %arg8[%c0_28, %c2, %c0_29, %c0_30], %91 {strides = array<i32>} : memref<1x4x16x16xbf16, #tpu.memory_space<vmem>>, vector<1x1x16x16xbf16>,
    %cst_31 = arith.constant dense<0.000000e+00> : vector<16x8xf32>
    %92 = tpu.matmul %88, %72, %cst_31 {dimension_numbers = #tpu.dot_dimension_numbers<[1], [0], [0], [1], [0, 0, 1, 1], [], []>} : vector<16x16xbf16>, vector<16x8xbf16>, vector<16x8xf32> -> vector<16x8xf32>
    %93 = arith.truncf %92 : vector<16x8xf32> to vector<16x8xbf16>
    %94 = vector.extract_strided_slice %14 {offsets = [0, 24], sizes = [16, 8], strides = [1, 1]} : vector<16x32xbf16> to vector<16x8xbf16>
    %95 = vector.extract_strided_slice %16 {offsets = [0, 24], sizes = [16, 8], strides = [1, 1]} : vector<16x32xbf16> to vector<16x8xbf16>
    %96 = vector.extract_strided_slice %18 {offsets = [0, 24], sizes = [16, 8], strides = [1, 1]} : vector<16x32xbf16> to vector<16x8xbf16>
    %cst_32 = arith.constant dense<0.000000e+00> : vector<16x16xf32>
    %97 = tpu.matmul %94, %95, %cst_32 {dimension_numbers = #tpu.dot_dimension_numbers<[1], [1], [0], [0], [0, 0, 1, 0], [], []>} : vector<16x8xbf16>, vector<16x8xbf16>, vector<16x16xf32> -> vector<16x16xf32>
    %cst_33 = arith.constant -1.000000e+30 : f32
    %98 = vector.shape_cast %21 : vector<1x16xi1> to vector<1x16xi1>
    %99 = vector.broadcast %98 : vector<1x16xi1> to vector<16x16xi1>
    %100 = vector.broadcast %cst_33 : f32 to vector<16x16xf32>
    %101 = arith.select %99, %97, %100 : vector<16x16xi1>, vector<16x16xf32>
    %cst_34 = arith.constant dense<0xFF800000> : vector<16xf32>
    %102 = vector.multi_reduction <maximumf>, %101, %cst_34 [1] : vector<16x16xf32> to vector<16xf32>
    %103 = vector.shape_cast %102 : vector<16xf32> to vector<16x1xf32>
    %104 = vector.broadcast %103 : vector<16x1xf32> to vector<16x16xf32>
    %105 = arith.subf %101, %104 : vector<16x16xf32>
    %106 = math.exp %105 : vector<16x16xf32>
    %cst_35 = arith.constant dense<0.000000e+00> : vector<16xf32>
    %107 = vector.multi_reduction <add>, %106, %cst_35 [1] : vector<16x16xf32> to vector<16xf32>
    %108 = vector.shape_cast %107 : vector<16xf32> to vector<16x1xf32>
    %109 = tpu.reciprocal %108 {approx = true} : vector<16x1xf32> -> vector<16x1xf32>
    %110 = vector.broadcast %109 : vector<16x1xf32> to vector<16x16xf32>
    %111 = arith.mulf %106, %110 : vector<16x16xf32>
    %112 = arith.truncf %111 : vector<16x16xf32> to vector<16x16xbf16>
    %c0_36 = arith.constant 0 : index
    %c3 = arith.constant 3 : index
    %c0_37 = arith.constant 0 : index
    %c0_38 = arith.constant 0 : index
    %113 = vector.load %arg8[%c0_36, %c3, %c0_37, %c0_38] : memref<1x4x16x16xbf16, #tpu.memory_space<vmem>>, vector<1x1x16x16xbf16>
    %114 = vector.shape_cast %113 : vector<1x1x16x16xbf16> to vector<16x16xbf16>
    %115 = vector.shape_cast %112 : vector<16x16xbf16> to vector<1x1x16x16xbf16>
    tpu.vector_store %arg8[%c0_36, %c3, %c0_37, %c0_38], %115 {strides = array<i32>} : memref<1x4x16x16xbf16, #tpu.memory_space<vmem>>, vector<1x1x16x16xbf16>,
    %cst_39 = arith.constant dense<0.000000e+00> : vector<16x8xf32>
    %116 = tpu.matmul %112, %96, %cst_39 {dimension_numbers = #tpu.dot_dimension_numbers<[1], [0], [0], [1], [0, 0, 1, 1], [], []>} : vector<16x16xbf16>, vector<16x8xbf16>, vector<16x8xf32> -> vector<16x8xf32>
    %117 = arith.truncf %116 : vector<16x8xf32> to vector<16x8xbf16>
    %118 = tpu.concatenate %45, %69, %93, %117 in 1 : vector<16x8xbf16>, vector<16x8xbf16>, vector<16x8xbf16>, vector<16x8xbf16> -> vector<16x32xbf16>
    %119 = arith.index_cast %arg1 : i32 to index
    %c0_40 = arith.constant 0 : index
    %c0_41 = arith.constant 0 : index
    %120 = vector.load %arg9[%119, %c0_40, %c0_41] : memref<1x16x32xbf16, #tpu.memory_space<vmem>>, vector<1x16x32xbf16>
    %121 = vector.shape_cast %120 : vector<1x16x32xbf16> to vector<16x32xbf16>
    %122 = vector.shape_cast %118 : vector<16x32xbf16> to vector<1x16x32xbf16>
    tpu.vector_store %arg9[%119, %c0_40, %c0_41], %122 {strides = array<i32>} : memref<1x16x32xbf16, #tpu.memory_space<vmem>>, vector<1x16x32xbf16>,
    %c0_i32 = arith.constant 0 : i32
    %123 = arith.cmpi eq, %arg1, %c0_i32 : i32
    %124 = arith.extui %123 : i1 to i32
    %c0_i32_42 = arith.constant 0 : i32
    %125 = arith.cmpi ne, %124, %c0_i32_42 : i32
    scf.if %125 {
      %c0_43 = arith.constant 0 : index
      %c0_44 = arith.constant 0 : index
      %c0_45 = arith.constant 0 : index
      %126 = vector.load %arg9[%c0_43, %c0_44, %c0_45] : memref<1x16x32xbf16, #tpu.memory_space<vmem>>, vector<1x16x32xbf16>
      %127 = vector.shape_cast %126 : vector<1x16x32xbf16> to vector<16x32xbf16>
      %c0_46 = arith.constant 0 : index
      %c0_47 = arith.constant 0 : index
      %c0_48 = arith.constant 0 : index
      %128 = vector.load %arg5[%c0_46, %c0_47, %c0_48] : memref<1x32x32xbf16, #tpu.memory_space<vmem>>, vector<1x32x32xbf16>
      %129 = vector.shape_cast %128 : vector<1x32x32xbf16> to vector<32x32xbf16>
      %cst_49 = arith.constant dense<0.000000e+00> : vector<16x32xf32>
      %130 = tpu.matmul %127, %129, %cst_49 {dimension_numbers = #tpu.dot_dimension_numbers<[1], [0], [0], [1], [0, 0, 1, 1], [], []>} : vector<16x32xbf16>, vector<32x32xbf16>, vector<16x32xf32> -> vector<16x32xf32>
      %c0_50 = arith.constant 0 : index
      %c0_51 = arith.constant 0 : index
      %131 = vector.load %arg6[%c0_50, %c0_51] : memref<1x32xf32, #tpu.memory_space<vmem>>, vector<1x32xf32>
      %132 = vector.broadcast %131 : vector<1x32xf32> to vector<16x32xf32>
      %133 = arith.addf %130, %132 : vector<16x32xf32>
      %c0_52 = arith.constant 0 : index
      %c0_53 = arith.constant 0 : index
      %c0_54 = arith.constant 0 : index
      %134 = vector.load %arg7[%c0_52, %c0_53, %c0_54] : memref<1x16x32xf32, #tpu.memory_space<vmem>>, vector<1x16x32xf32>
      %135 = vector.shape_cast %134 : vector<1x16x32xf32> to vector<16x32xf32>
      %136 = vector.shape_cast %133 : vector<16x32xf32> to vector<1x16x32xf32>
      tpu.vector_store %arg7[%c0_52, %c0_53, %c0_54], %136 {strides = array<i32>} : memref<1x16x32xf32, #tpu.memory_space<vmem>>, vector<1x16x32xf32>,
    } else {
    }
    return
  }
  func.func @transform_0(%arg0: i32, %arg1: i32) -> (i32, i32, i32) {
    %c0_i32 = arith.constant 0 : i32
    %c0_i32_0 = arith.constant 0 : i32
    %c0_i32_1 = arith.constant 0 : i32
    return %arg0, %c0_i32, %c0_i32_0 : i32, i32, i32
  }
  func.func @transform_1(%arg0: i32, %arg1: i32) -> (i32, i32, i32) {
    %c0_i32 = arith.constant 0 : i32
    %c0_i32_0 = arith.constant 0 : i32
    %c0_i32_1 = arith.constant 0 : i32
    %c0_i32_2 = arith.constant 0 : i32
    return %c0_i32, %c0_i32_0, %c0_i32_1 : i32, i32, i32
  }
  func.func @transform_2(%arg0: i32, %arg1: i32) -> (i32, i32, i32) {
    %c0_i32 = arith.constant 0 : i32
    %c0_i32_0 = arith.constant 0 : i32
    %c0_i32_1 = arith.constant 0 : i32
    %c0_i32_2 = arith.constant 0 : i32
    return %c0_i32, %c0_i32_0, %c0_i32_1 : i32, i32, i32
  }
  func.func @transform_3(%arg0: i32, %arg1: i32) -> (i32, i32, i32) {
    %c0_i32 = arith.constant 0 : i32
    %c0_i32_0 = arith.constant 0 : i32
    %c0_i32_1 = arith.constant 0 : i32
    %c0_i32_2 = arith.constant 0 : i32
    return %c0_i32, %c0_i32_0, %c0_i32_1 : i32, i32, i32
  }
  func.func @transform_4(%arg0: i32, %arg1: i32) -> (i32, i32) {
    %c0_i32 = arith.constant 0 : i32
    %c0_i32_0 = arith.constant 0 : i32
    %c0_i32_1 = arith.constant 0 : i32
    return %c0_i32, %c0_i32_0 : i32, i32
  }
  func.func @transform_5(%arg0: i32, %arg1: i32) -> (i32, i32, i32) {
    %c0_i32 = arith.constant 0 : i32
    %c0_i32_0 = arith.constant 0 : i32
    %c0_i32_1 = arith.constant 0 : i32
    return %arg0, %c0_i32, %c0_i32_0 : i32, i32, i32
  }
  func.func @transform_6(%arg0: i32, %arg1: i32) -> (i32, i32, i32, i32) {
    %c0_i32 = arith.constant 0 : i32
    %c0_i32_0 = arith.constant 0 : i32
    %c0_i32_1 = arith.constant 0 : i32
    return %arg0, %arg1, %c0_i32, %c0_i32_0 : i32, i32, i32, i32
  }
}

</mosaic_0001>

<bundles_post_ra>
// kernel: tpu_custom_call.1
= control target key start
LH: loop header
LB: loop body
LE: loop exit
PB: predicated region body
PF: predicated region fallthrough
CT: control target
= control target key end

     0   :  { %12 = vsyncpa [#allocation4], 0  ;;  %s2224_s0 = inlined_call_operand.hbm [shape: bf16[2,16,32], index: 0, kind: input, shape index: {}]   ;;  %s2225_s1 = inlined_call_operand.hbm [shape: bf16[1,32,96], index: 1, kind: input, shape index: {}]   ;;  %s2226_s2 = inlined_call_operand.vmem [shape: f32[1,1,96], index: 2, kind: input, shape index: {}]   ;;  %s2227_s3 = inlined_call_operand.hbm [shape: bf16[1,32,32], index: 3, kind: input, shape index: {}]   ;;  %s2228_s4 = inlined_call_operand.vmem [shape: f32[1,32], index: 4, kind: input, shape index: {}]   ;;  %s2229_s5 = inlined_call_operand.hbm [shape: f32[2,16,32], index: 5, kind: output, shape index: {0}]   ;;  %s2230_s6 = inlined_call_operand.hbm [shape: bf16[2,4,16,16], index: 6, kind: output, shape index: {1}]  }
   0x1   :  { %14 = vsyncpa [#allocation4 + $0x1], 0 }
   0x2   :  { %15 = vsyncpa [#allocation7], 0 }
   0x3   :  { %16 = vsyncpa [#allocation5], 0 }
   0x4   :  { %18 = vsyncpa [#allocation5 + $0x1], 0 }
   0x5   :  { %19 = vsyncpa [#allocation11], 0 }
   0x6   :  { %21 = vsyncpa [#allocation11 + $0x1], 0  ;;  %s1787_s21 = smov 0   ;;  %s1789_s22 = smov 0  }
   0x7   :  { %s1791_s23 = smov 0   ;;  %s1793_s24 = smov 0  }
   0x8   :  { %s1795_s25 = smov 0   ;;  %s1797_s26 = smov 0  }
   0x9 LB: > { %s1225_s27 = sadd.s32 4294967295, %s1725_s26   ;;  %s1226_s28 = sadd.s32 4294967294, %s1725_s26   ;;  %s1725_s26 = sphi %s1797_s26, %s27_s26   ;;  %s1721_s25 = sphi %s1795_s25, %s2257_s25   ;;  %s1717_s24 = sphi %s1793_s24, %s2256_s24   ;;  %s1713_s23 = sphi %s1791_s23, %s2255_s23   ;;  %s1709_s22 = sphi %s1789_s22, %s2254_s22   ;;  %s1705_s21 = sphi %s1787_s21, %s2253_s21  }
   0xa   : > { %p59_p0 = scmp.ne.s32.totalorder %s1709_s22, %s1705_s21  ;;  %p1821_p1 = scmp.eq.s32.totalorder %s1225_s27, 0 }
   0xb   : > { %p1825_p2 = scmp.eq.s32.totalorder %s1225_s27, 1  ;;  %p173_p3 = scmp.eq.s32.totalorder %s1226_s28, 1 }
   0xc   : > { %s2237_s29 = scalar_select %p1821_p1, 1, 0 }
   0xd   : > { %p1831_p4 = por %p1821_p1, %p59_p0  ;;  %p1227_p5 = scmp.ge.s32.totalorder %s1725_s26, 1 }
   0xe   : > { %p1836_p6 = por %p173_p3, %p59_p0  ;;  %p208_p7 = scmp.lt.s32.totalorder %s1725_s26, 3 }
   0xf   : > { %s2239_s7 = scalar_select %p1831_p4, 1, 0 }
  0x10   : > { %s2240_s8 = scalar_select %p1836_p6, 1, 0 }
  0x11   : > { %p1841_p8 = pnand %p1227_p5, %p208_p7  ;;  %s1727_s10 = smov [#allocation6]  }
  0x12   : > { %2241 = sst [smem:[#allocation16_spill]] %s2240_s8  ;;  %s220_s11 = sshll.u32 %s1727_s10, 4  ;;  %s1845_s11 = int_to_ptr.vmem [resolvable:$true] %s220_s11 }
  0x13   : > { %p1390_p9 = pneg %p1841_p8  ;;  %s1728_s13 = smov [#allocation8]  }
  0x14   : > { %s236_s14 = sshll.u32 %s1728_s13, 4  ;;  %s1521_s17 = scalar_lea.hbm %s2225_s1, 256  ;;  %s1856_s14 = int_to_ptr.vmem [resolvable:$true] %s236_s14 }
  0x15   : > { %p1852_p11 = pnand %p1390_p9, %p1821_p1  ;;  %p1522_p12 = scmp.ne.s32.totalorder %s2225_s1, %s1521_s17 }
  0x16   : > { %p1528_p5 = scmp.lt.u32.totalorder %s1521_s17, %s2225_s1 }
  0x17   : > { %p1523_p13 = pneg %p1852_p11 }
  0x19   : > { %p1524_p0 = pnand %p1523_p13, %p1522_p12 }
  0x1b   : > { %p1525_p3 = pneg %p1524_p0 }
  0x1d   : > { %p1530_p7 = pnand %p1528_p5, %p1525_p3 }
  0x1f   : > { %1533 = shalt.err (!%p1530_p7)
}
  0x20   : > { %s1534_s28 = scalar_lea.vmem %s1845_s11, 256  ;;  %p1542_p1 = scmp.lt.s32.totalorder %s1845_s11, %s1845_s11 }
  0x21   : > { %p1535_p9 = scmp.ne.s32.totalorder %s1845_s11, %s1534_s28  ;;  %p1543_p12 = scmp.lt.s32.totalorder %s1534_s28, %s1534_s28 }
  0x23   : > { %p1537_p10 = pnand %p1535_p9, %p1523_p13  ;;  %p1544_p0 = por %p1543_p12, %p1542_p1 }
  0x25   : > { %p1538_p6 = pneg %p1537_p10 }
  0x27   : > { %p1545_p4 = pnand %p1544_p0, %p1538_p6 }
  0x29   : > { %1548 = shalt.err (!%p1545_p4)
}
  0x2a   : > { %s2235_s10 = smov 64   ;;  %s1730_s13 = smov 4  }
  0x2b   : > { %1393 = dma.hbm_to_vmem [thread:$0]  (!%p1852_p11), %s2225_s1, 256, %s1845_s11, [#allocation7], %s2235_s10, %s2235_s10, %s1730_s13  }
  0x2c   : > { %s1549_s19 = scalar_lea.hbm %s2227_s3, 256 }
  0x2d   : > { %p1550_p1 = scmp.ne.s32.totalorder %s2227_s3, %s1549_s19  ;;  %p1556_p10 = scmp.lt.u32.totalorder %s1549_s19, %s2227_s3 }
  0x2f   : > { %p1552_p4 = pnand %p1550_p1, %p1523_p13 }
  0x31   : > { %p1553_p6 = pneg %p1552_p4 }
  0x33   : > { %p1558_p3 = pnand %p1556_p10, %p1553_p6 }
  0x35   : > { %1561 = shalt.err (!%p1558_p3)
}
  0x36   : > { %s1562_s11 = scalar_lea.vmem %s1856_s14, 256  ;;  %p1570_p12 = scmp.lt.s32.totalorder %s1856_s14, %s1856_s14 }
  0x37   : > { %p1563_p5 = scmp.ne.s32.totalorder %s1856_s14, %s1562_s11  ;;  %p1571_p0 = scmp.lt.s32.totalorder %s1562_s11, %s1562_s11 }
  0x39   : > { %p1565_p7 = pnand %p1563_p5, %p1523_p13  ;;  %p1572_p1 = por %p1571_p0, %p1570_p12 }
  0x3b   : > { %p1566_p9 = pneg %p1565_p7 }
  0x3d   : > { %p1573_p4 = pnand %p1572_p1, %p1566_p9 }
  0x3f   : > { %1576 = shalt.err (!%p1573_p4)
}
  0x40   : > { %1396 = dma.hbm_to_vmem [thread:$0]  (!%p1852_p11), %s2227_s3, 256, %s1856_s14, [#allocation7], %s2235_s10, %s2235_s10, %s1730_s13  }
  0x41   : > { %s39_s12 = sadd.s32 1, %s1721_s25  ;;  %s46_s16 = sadd.s32 1, %s1713_s23 }
  0x42   : > { %p41_p13 = scmp.ge.s32.totalorder %s39_s12, 2  ;;  %p53_p6 = scmp.ne.s32.totalorder %s1713_s23, %s1709_s22 }
  0x43   : > { %p54_p10 = scmp.eq.s32.totalorder %s1725_s26, 0  ;;  %p1410_p3 = scmp.lt.s32.totalorder %s1725_s26, 2 }
  0x44   : > { %s2259_s12 = smov (%p41_p13, %s39_s12), 0  ;;  %p1926_p7 = por %p1825_p2, %p53_p6 }
  0x45   : > { %p55_p5 = por %p54_p10, %p53_p6  ;;  %s43_s18 = ssub.s32 %s1721_s25, %s2259_s12 }
  0x46   : > { %s2244_s17 = scalar_select %p1926_p7, 1, 0 }
  0x47   : > { %s253_s19 = sand.u32 1, %s1713_s23   ;;  %p44_p9 = scmp.eq.s32.totalorder %s43_s18, 0 }
  0x48   : > { %s1231_s14 = sshll.u32 %s253_s19, 3  ;;  %s1279_s20 = sshll.u32 %s1721_s25, 7 }
  0x49   : > { %s1935_s27 = scalar_select %p44_p9, %s1713_s23, %s46_s16  }
  0x4a   : > { %s1940_s8 = scalar_lea.hbm %s2224_s0, %s1279_s20  ;;  %s257_s30 = scalar_lea.vmem [#allocation3], %s1231_s14 }
  0x4b   : > { %s264_s15 = sshll.u32 %s257_s30, 4  ;;  %p1944_p2 = pnand %p1410_p3, %p55_p5  ;;  %s1948_s15 = int_to_ptr.vmem [resolvable:$true] %s264_s15 }
  0x4c   : > { %s1950_s16 = scalar_lea.sflag [#allocation4], %s253_s19  ;;  %s1577_s18 = scalar_lea.hbm %s1940_s8, 128 }
  0x4d   : > { %p1578_p11 = scmp.ne.s32.totalorder %s1940_s8, %s1577_s18  ;;  %p1579_p12 = pneg %p1944_p2 }
  0x4e   : > { %s1582_s28 = scalar_lea.hbm %s2224_s0, 256  ;;  %p1583_p4 = scmp.lt.u32.totalorder %s1940_s8, %s2224_s0 }
  0x4f   : > { %p1580_p0 = pnand %p1579_p12, %p1578_p11  ;;  %p1584_p13 = scmp.lt.u32.totalorder %s1582_s28, %s1577_s18 }
  0x50   : > { %p1586_p10 = scmp.lt.u32.totalorder %s1577_s18, %s1940_s8 }
  0x51   : > { %p1581_p1 = pneg %p1580_p0  ;;  %p1585_p6 = por %p1584_p13, %p1583_p4 }
  0x53   : > { %p1587_p3 = por %p1586_p10, %p1585_p6 }
  0x55   : > { %p1588_p5 = pnand %p1587_p3, %p1581_p1 }
  0x57   : > { %1591 = shalt.err (!%p1588_p5)
}
  0x58   : > { %s1592_s19 = scalar_lea.vmem %s1948_s15, 128  ;;  %s1731_s14 = smov [#allocation3]  }
  0x59   : > { %p1593_p9 = scmp.ne.s32.totalorder %s1948_s15, %s1592_s19  ;;  %s1597_s20 = sshll.u32 %s1731_s14, 4  ;;  %s1598_s20 = int_to_ptr.vmem [resolvable:$false] %s1597_s20 }
  0x5a   : > { %s1599_s11 = scalar_lea.vmem %s1598_s20, 256  ;;  %p1600_p7 = scmp.lt.s32.totalorder %s1948_s15, %s1598_s20 }
  0x5b   : > { %p1595_p11 = pnand %p1593_p9, %p1579_p12  ;;  %p1601_p4 = scmp.lt.s32.totalorder %s1599_s11, %s1592_s19 }
  0x5d   : > { %p1596_p0 = pneg %p1595_p11  ;;  %p1602_p13 = por %p1601_p4, %p1600_p7 }
  0x5f   : > { %p1603_p6 = pnand %p1602_p13, %p1596_p0 }
  0x61   : > { %1606 = shalt.err (!%p1603_p6)
}
  0x62   : > { %s2246_s18 = smov 64   ;;  %276 = sbr.rel (%p1841_p8) target bundleno = 1631 (0x65f), region = 40 }
  0x63   : > { %1400 = dma.hbm_to_vmem [thread:$0]  (!%p1944_p2), %s1940_s8, 128, %s1948_s15, %s1950_s16, %s2246_s18, %s2246_s18, %s1730_s13  }
  0x64   : > { %s1984_s28 = sand.u32 (!%p1841_p8), 1, %s1709_s22   ;;  %p2247_p7 = scmp.ne.s32.totalorder (!%p1841_p8), %s2239_s7, 0 }
  0x65   : > { %s1235_s30 = sshll.u32 (!%p1841_p8), %s1984_s28, 3  ;;  %s279_s19 = scalar_lea.sflag (!%p1841_p8), [#allocation4], %s1984_s28 }
  0x66   : > { %s282_s14 = scalar_lea.vmem (!%p1841_p8), [#allocation3], %s1235_s30 }
  0x69   : > { %1688 = dma.done.wait (%p2247_p7), %s279_s19, 128  }
  0x6a   : > { %1690 = vsyncadd (%p2247_p7), %s279_s19, 4294967168  ;;  %p2248_p12 = scmp.ne.s32.totalorder %s2237_s29, 0 }
  0x6c   : > { %1692 = dma.done.wait (%p2248_p12), [#allocation7], 512  }
  0x6d   : > { %1694 = vsyncadd (%p2248_p12), [#allocation7], 4294966784  ;;  %v1732_v0 = vmov 0.0   ;;  %vm1733_vm0 = vmmov 0   ;;  %v1484_v1 = vld [vmem:[#allocation6] sm:$0xff]   ;;  %v1485_v2 = vld [vmem:[#allocation6 + $0x8] sm:$0xff]   ;;  %v409_v26 = vlaneseq }
  0x6e   : > { %1312 = vmatprep.subr.bf16.mxu0 %v1732_v0  ;;  %1316 = vmatprep.mubr.msk.bf16.mxu0 %vm1733_vm0, %v1732_v0  ;;  %v1486_v3 = vld [vmem:[%s282_s14] sm:$0xff]   ;;  %vm360_vm1 = vcmask 261120   ;;  %v1240_v4 = vld [vmem:[%s2226_s2] ss:$0 sm:$0xff]  ;;  %s1734_s9 = smov 96   ;;  %s1735_s10 = smov 120  }
  0x6f   : > { %1320 = vmatprep.subr.bf16.mxu1 %v1732_v0  ;;  %1322 = vmatprep.mubr.msk.bf16.mxu1 %vm1733_vm0, %v1732_v0  ;;  %s1736_s13 = smov 88   ;;  %s1737_s8 = smov 80   ;;  %vm415_vm2 = vcmask 64512   ;;  %v410_v27 = vand.u32 127, %v409_v26  ;;  %vm467_vm4 = vcmask 130048   ;;  %vm498_vm5 = vcmask 125952  }
  0x70   : > { %1313 = vmatpush3.bf16.msra.mxu0 %v1484_v1  ;;  %s1738_s15 = smov 112   ;;  %s1739_s16 = smov 72   ;;  %vm966_vm6 = vcmask 195584  }
  0x71   : > { %1314 = vmatprep.subr.bf16.mxu0 %v1732_v0  ;;  %s1740_s20 = smov 104   ;;  %vm411_vm3 = vcmp.lt.s32.totalorder %v410_v27, 8  ;;  %s1741_s11 = smov 56  }
  0x72   : > { %s1742_s18 = smov 64   ;;  %s1743_s30 = smov 48  }
  0x73   : > { %s1744_s19 = smov 40   ;;  %s1239_s14 = sshll.u32 %s1984_s28, 5 }
  0x74   : > { %1315 = vmatpush3.bf16.msra.mxu0 %v1485_v2  ;;  %s2086_s29 = scalar_lea.vmem [#allocation10], %s1239_s14  ;;  %s1745_s7 = smov 8  }
  0x75   : > { %1326 = vmatprep.subr.bf16.mxu0 %v1732_v0  ;;  %p2249_p2 = scmp.ne.s32.totalorder %s2244_s17, 0 }
  0x77   : > { %1317 = vmatmul.mubr.msk.bf16.vlgmr.msra.gmra.mrb[0].mxu0 %vm360_vm1, %v1486_v3 }
  0x78   : > { %1328 = vmatprep.mubr.msk.bf16.mxu0 %vm1733_vm0, %v1732_v0 }
 0x14a   : > { %v398_v5 = vpop.f32.mrb[0].mxu0 }
 0x14b   : > { %v399_v6 = vadd.f32 %v1240_v4, %v398_v5  ;;  %v1318_v7 = vpop.f32.mrb[1].mxu0 }
 0x14c   : > { %v401_v8 = vpop.f32.mrb[2].mxu0 }
 0x14d   : > { %v402_v9 = vadd.f32 %v1240_v4, %v401_v8  ;;  %v1319_v10 = vpop.f32.mrb[3].mxu0  ;;  %v405_v11 = vmul.f32 0.35355338, %v399_v6 }
 0x14f   : > { %v406_v12 = vmul.f32 0.35355338, %v402_v9  ;;  %v2010_v13 = vpack.c.bf16 %v402_v9, %v399_v6 }
 0x151   : > { %v407_v14 = vpack.c.bf16 %v406_v12, %v405_v11  ;;  %413 = vrot.lane.b32.xlu0 %v2010_v13, %s1734_s9  ;;  %s1746_s9 = smov 16  }
 0x153   : > { %550 = vrot.lane.b32.xlu1 %v407_v14, %s1735_s10  ;;  %s1747_s10 = smov 24  }
 0x155   : > { %552 = vrot.lane.b32.xlu0 %v2010_v13, %s1736_s13  ;;  %s1289_s13 = sshll.u32 %s1717_s24, 9 }
 0x157   : > { %686 = vrot.lane.b32.xlu1 %v2010_v13, %s1737_s8 }
 0x159   : > { %684 = vrot.lane.b32.xlu0 %v407_v14, %s1738_s15 }
 0x15b   : > { %820 = vrot.lane.b32.xlu1 %v2010_v13, %s1739_s16  ;;  %s2131_s16 = scalar_lea.hbm %s2230_s6, %s1289_s13 }
 0x15d   : > { %818 = vrot.lane.b32.xlu0 %v407_v14, %s1740_s20  ;;  %s1085_s20 = sshll.u32 %s2086_s29, 4  ;;  %s2134_s20 = int_to_ptr.vmem [resolvable:$true] %s1085_s20 }
 0x1c3   : > { %v414_v15 = vpop.permute.xlu0 %413 }
 0x1c4   : > { %v420_v16 = vsel %vm415_vm2, %v414_v15, 0 }
 0x1c5   : > { %1321 = vmatpush3.bf16.xpose.msra.mxu1 %v420_v16  ;;  %v551_v18 = vpop.permute.xlu1 %550 }
 0x1c6   : > { %1332 = vmatprep.subr.bf16.mxu1 %v1732_v0 }
 0x1c7   : > { %v553_v17 = vpop.permute.xlu0 %552 }
 0x1c8   : > { %v558_v19 = vsel %vm415_vm2, %v553_v17, 0 }
 0x1c9   : > { %v687_v20 = vpop.permute.xlu1 %686 }
 0x1ca   : > { %v692_v21 = vsel %vm415_vm2, %v687_v20, 0 }
 0x1cb   : > { %v685_v23 = vpop.permute.xlu0 %684 }
 0x1cc   : > { %1323 = vmatmul.mubr.msk.bf16.vlgmr.msra.gmra.mrb[0].mxu1 %vm415_vm2, %v407_v14 }
 0x1cd   : > { %1333 = vmatpush3.bf16.xpose.msra.mxu1 %v558_v19  ;;  %1334 = vmatprep.mubr.msk.bf16.mxu1 %vm1733_vm0, %v1732_v0  ;;  %v821_v22 = vpop.permute.xlu1 %820 }
 0x1ce   : > { %1344 = vmatprep.subr.bf16.mxu1 %v1732_v0  ;;  %v826_v24 = vsel %vm415_vm2, %v821_v22, 0 }
 0x1cf   : > { %v819_v25 = vpop.permute.xlu0 %818 }
 0x1d4   : > { %1335 = vmatmul.mubr.msk.bf16.vlgmr.msra.gmra.mrb[4].mxu1 %vm415_vm2, %v551_v18 }
 0x1d5   : > { %1345 = vmatpush3.bf16.xpose.msra.mxu1 %v692_v21  ;;  %1346 = vmatprep.mubr.msk.bf16.mxu1 %vm1733_vm0, %v1732_v0 }
 0x1d6   : > { %1356 = vmatprep.subr.bf16.mxu1 %v1732_v0 }
 0x1dc   : > { %1347 = vmatmul.mubr.msk.bf16.vlgmr.msra.gmra.mrb[8].mxu1 %vm415_vm2, %v685_v23 }
 0x1dd   : > { %1357 = vmatpush3.bf16.xpose.msra.mxu1 %v826_v24  ;;  %1358 = vmatprep.mubr.msk.bf16.mxu1 %vm1733_vm0, %v1732_v0 }
 0x1de   : > { %1368 = vmatprep.subr.bf16.mxu1 %v1732_v0 }
 0x1e4   : > { %1359 = vmatmul.mubr.msk.bf16.vlgmr.msra.gmra.mrb[12].mxu1 %vm415_vm2, %v819_v25 }
 0x1e5   : > { %1372 = vmatprep.mubr.msk.bf16.mxu1 %vm1733_vm0, %v1732_v0 }
 0x29f   : > { %v456_v28 = vpop.f32.mrb[0].mxu1 }
 0x2a0   : > { %v465_v29 = vsel %vm411_vm3, %v456_v28, -1e+30  ;;  %v1324_v30 = vpop.f32.mrb[1].mxu1 }
 0x2a1   : > { %v459_v31 = vpop.f32.mrb[2].mxu1  ;;  %v468_v32 = vsel %vm467_vm4, %v465_v29, -inf }
 0x2a2   : > { %v466_v33 = vsel %vm411_vm3, %v459_v31, -1e+30  ;;  %469 = vmax.xlane.f32.xlu1 %v468_v32  ;;  %v1325_v34 = vpop.f32.mrb[3].mxu1 }
 0x2a3   : > { %v471_v35 = vsel %vm467_vm4, %v466_v33, -inf }
 0x2a4   : > { %472 = vmax.xlane.f32.xlu0 %v471_v35 }
 0x2a7   : > { %v594_v36 = vpop.f32.mrb[4].mxu1 }
 0x2a8   : > { %v601_v37 = vsel %vm411_vm3, %v594_v36, -1e+30  ;;  %v1336_v38 = vpop.f32.mrb[5].mxu1 }
 0x2a9   : > { %v597_v39 = vpop.f32.mrb[6].mxu1  ;;  %v603_v40 = vsel %vm467_vm4, %v601_v37, -inf }
 0x2aa   : > { %v602_v41 = vsel %vm411_vm3, %v597_v39, -1e+30  ;;  %604 = vmax.xlane.f32.xlu0 %v603_v40  ;;  %v1337_v42 = vpop.f32.mrb[7].mxu1 }
 0x2ab   : > { %v606_v43 = vsel %vm467_vm4, %v602_v41, -inf }
 0x2ac   : > { %607 = vmax.xlane.f32.xlu1 %v606_v43 }
 0x2af   : > { %v728_v44 = vpop.f32.mrb[8].mxu1 }
 0x2b0   : > { %v735_v45 = vsel %vm411_vm3, %v728_v44, -1e+30  ;;  %v1348_v46 = vpop.f32.mrb[9].mxu1 }
 0x2b1   : > { %v731_v47 = vpop.f32.mrb[10].mxu1  ;;  %v737_v48 = vsel %vm467_vm4, %v735_v45, -inf }
 0x2b2   : > { %v736_v49 = vsel %vm411_vm3, %v731_v47, -1e+30  ;;  %738 = vmax.xlane.f32.xlu0 %v737_v48  ;;  %v1349_v50 = vpop.f32.mrb[11].mxu1 }
 0x2b3   : > { %v740_v51 = vsel %vm467_vm4, %v736_v49, -inf }
 0x2b4   : > { %741 = vmax.xlane.f32.xlu1 %v740_v51 }
 0x2b7   : > { %v862_v52 = vpop.f32.mrb[12].mxu1 }
 0x2b8   : > { %v869_v53 = vsel %vm411_vm3, %v862_v52, -1e+30  ;;  %v1360_v54 = vpop.f32.mrb[13].mxu1 }
 0x2b9   : > { %v865_v55 = vpop.f32.mrb[14].mxu1  ;;  %v871_v56 = vsel %vm467_vm4, %v869_v53, -inf }
 0x2ba   : > { %v870_v57 = vsel %vm411_vm3, %v865_v55, -1e+30  ;;  %872 = vmax.xlane.f32.xlu0 %v871_v56  ;;  %v1361_v58 = vpop.f32.mrb[15].mxu1 }
 0x2bb   : > { %v874_v59 = vsel %vm467_vm4, %v870_v57, -inf }
 0x2bc   : > { %875 = vmax.xlane.f32.xlu1 %v874_v59 }
 0x32f   : > { %v470_v60 = vpop.xlane.xlu1 %469 }
 0x330   : > { %v474_v61 = vsub.f32 %v465_v29, %v470_v60 }
 0x331   : > { %v473_v62 = vpop.xlane.xlu0 %472 }
 0x332   : > { %v476_v63 = vmul.f32 1.442695, %v474_v61  ;;  %v475_v1 = vsub.f32 %v466_v33, %v473_v62 }
 0x334   : > { %1489 = vpow2.f32 %v476_v63  ;;  %v478_v2 = vmul.f32 1.442695, %v475_v1 }
 0x336   : > { %1491 = vpow2.f32 %v478_v2 }
 0x337   : > { %v605_v3 = vpop.xlane.xlu0 %604 }
 0x338   : > { %v609_v4 = vsub.f32 %v601_v37, %v605_v3 }
 0x339   : > { %v608_v12 = vpop.xlane.xlu1 %607 }
 0x33a   : > { %v611_v5 = vmul.f32 1.442695, %v609_v4  ;;  %v610_v14 = vsub.f32 %v602_v41, %v608_v12 }
 0x33c   : > { %1493 = vpow2.f32 %v611_v5  ;;  %v613_v17 = vmul.f32 1.442695, %v610_v14 }
 0x33e   : > { %v1490_v6 = vpop.eup %1489  ;;  %1495 = vpow2.f32 %v613_v17 }
 0x33f   : > { %v480_v7 = vsel %vm467_vm4, %v1490_v6, 0.0  ;;  %v739_v16 = vpop.xlane.xlu0 %738 }
 0x340   : > { %v2053_v8 = vpop.eup %1491  ;;  %481 = vadd.xlane.f32.xlu0 %v480_v7  ;;  %v743_v20 = vsub.f32 %v735_v45, %v739_v16 }
 0x341   : > { %v483_v9 = vsel %vm467_vm4, %v2053_v8, 0.0  ;;  %v742_v15 = vpop.xlane.xlu1 %741 }
 0x342   : > { %484 = vadd.xlane.f32.xlu1 %v483_v9  ;;  %v744_v18 = vsub.f32 %v736_v49, %v742_v15  ;;  %v745_v24 = vmul.f32 1.442695, %v743_v20 }
 0x344   : > { %v747_v22 = vmul.f32 1.442695, %v744_v18 }
 0x346   : > { %v2057_v10 = vpop.eup %1493  ;;  %1497 = vpow2.f32 %v747_v22 }
 0x347   : > { %v615_v11 = vsel %vm467_vm4, %v2057_v10, 0.0  ;;  %v873_v21 = vpop.xlane.xlu0 %872  ;;  %1499 = vpow2.f32 %v745_v24 }
 0x348   : > { %616 = vadd.xlane.f32.xlu0 %v615_v11  ;;  %v877_v25 = vsub.f32 %v869_v53, %v873_v21  ;;  %v1496_v28 = vpop.eup %1495 }
 0x349   : > { %v876_v19 = vpop.xlane.xlu1 %875  ;;  %v618_v29 = vsel %vm467_vm4, %v1496_v28, 0.0 }
 0x34a   : > { %v878_v23 = vsub.f32 %v870_v57, %v876_v19  ;;  %v879_v27 = vmul.f32 1.442695, %v877_v25 }
 0x34c   : > { %v881_v26 = vmul.f32 1.442695, %v878_v23 }
 0x34e   : > { %1501 = vpow2.f32 %v881_v26 }
 0x34f   : > { %1503 = vpow2.f32 %v879_v27  ;;  %v1487_v27 = vld [vmem:[#allocation8] sm:$0xff]  }
 0x350   : > { %v2065_v30 = vpop.eup %1497  ;;  %1369 = vmatpush3.bf16.msra.mxu1 %v1487_v27 }
 0x351   : > { %v2067_v31 = vpop.eup %1499  ;;  %v752_v32 = vsel %vm467_vm4, %v2065_v30, 0.0  ;;  %1370 = vmatprep.subr.bf16.mxu1 %v1732_v0 }
 0x352   : > { %v749_v34 = vsel %vm467_vm4, %v2067_v31, 0.0 }
 0x353   : > { %636 = vrot.lane.b32.xlu1 %v2010_v13, %s1741_s11  ;;  %s1053_s11 = scalar_lea.sflag [#allocation11], %s1984_s28 }
 0x358   : > { %v2071_v33 = vpop.eup %1501 }
 0x359   : > { %v2075_v35 = vpop.eup %1503  ;;  %v886_v36 = vsel %vm467_vm4, %v2071_v33, 0.0 }
 0x35a   : > { %v883_v37 = vsel %vm467_vm4, %v2075_v35, 0.0 }
 0x35e   : > { %501 = vrot.lane.b32.xlu0 %v2010_v13, %s1742_s18 }
 0x377   : > { %619 = vadd.xlane.f32.xlu1 %v618_v29 }
 0x37b   : > { %753 = vadd.xlane.f32.xlu1 %v752_v32 }
 0x37d   : > { %750 = vadd.xlane.f32.xlu0 %v749_v34 }
 0x37f   : > { %887 = vadd.xlane.f32.xlu1 %v886_v36 }
 0x381   : > { %884 = vadd.xlane.f32.xlu0 %v883_v37 }
 0x390   : > { %770 = vrot.lane.b32.xlu1 %v2010_v13, %s1743_s30  ;;  %s1607_s30 = scalar_lea.vmem %s2134_s20, 512 }
 0x391   : > { %p1608_p8 = scmp.ne.s32.totalorder %s2134_s20, %s1607_s30 }
 0x393   : > { %p1609_p1 = pnand %p1608_p8, %p2249_p2 }
 0x395   : > { %p1610_p10 = pneg %p1609_p1 }
 0x397   : > { %904 = vrot.lane.b32.xlu0 %v2010_v13, %s1744_s19  ;;  %s1748_s19 = smov [#allocation10]  }
 0x398   : > { %s1611_s14 = sshll.u32 %s1748_s19, 4  ;;  %s1612_s14 = int_to_ptr.vmem [resolvable:$false] %s1611_s14 }
 0x399   : > { %p1614_p3 = scmp.lt.s32.totalorder %s2134_s20, %s1612_s14 }
 0x3cd   : > { %v482_v38 = vpop.xlane.xlu0 %481 }
 0x3ce   : > { %1505 = vrcp.f32 %v482_v38 }
 0x3cf   : > { %v485_v39 = vpop.xlane.xlu1 %484 }
 0x3d0   : > { %1507 = vrcp.f32 %v485_v39 }
 0x3d3   : > { %v637_v48 = vpop.permute.xlu1 %636 }
 0x3d5   : > { %v617_v40 = vpop.xlane.xlu0 %616 }
 0x3d6   : > { %1509 = vrcp.f32 %v617_v40 }
 0x3d8   : > { %v1506_v41 = vpop.eup %1505 }
 0x3d9   : > { %v488_v42 = vmul.f32 %v1506_v41, %v1490_v6  ;;  %v502_v43 = vpop.permute.xlu0 %501 }
 0x3da   : > { %v1508_v44 = vpop.eup %1507  ;;  %1327 = vmatpush3.bf16.msra.mxu0 %v502_v43 }
 0x3db   : > { %v1280_v45 = vpack.c.bf16 %v488_v42, %v488_v42  ;;  %v489_v46 = vmul.f32 %v1508_v44, %v2053_v8  ;;  %1338 = vmatprep.subr.bf16.mxu0 %v1732_v0 }
 0x3dd   : > { %499 = vst.msk [vmem:[%s2086_s29] sm:$0xf] %vm498_vm5, %v1280_v45  ;;  %v1281_v13 = vpack.c.bf16 %v489_v46, %v489_v46  ;;  %v490_v47 = vpack.c.bf16 %v489_v46, %v488_v42 }
 0x3df   : > { %500 = vst.msk [vmem:[%s2086_s29 + $0x4] sm:$0xf] %vm498_vm5, %v1281_v13  ;;  %1329 = vmatmul.mubr.msk.bf16.vlgmr.msra.gmra.mrb[4].mxu0 %vm467_vm4, %v490_v47 }
 0x3e0   : > { %v1510_v49 = vpop.eup %1509  ;;  %1339 = vmatpush3.bf16.msra.mxu0 %v637_v48  ;;  %1340 = vmatprep.mubr.msk.bf16.mxu0 %vm1733_vm0, %v1732_v0 }
 0x3e1   : > { %v623_v50 = vmul.f32 %v1510_v49, %v2057_v10  ;;  %1350 = vmatprep.subr.bf16.mxu0 %v1732_v0 }
 0x3e3   : > { %v1282_v51 = vpack.c.bf16 %v623_v50, %v623_v50 }
 0x3e5   : > { %1252 = vst.msk [vmem:[%s2086_s29 + $0x8] sm:$0xf] %vm498_vm5, %v1282_v51 }
 0x404   : > { %v620_v52 = vpop.xlane.xlu1 %619 }
 0x405   : > { %1511 = vrcp.f32 %v620_v52 }
 0x408   : > { %v754_v53 = vpop.xlane.xlu1 %753 }
 0x409   : > { %1513 = vrcp.f32 %v754_v53 }
 0x40a   : > { %v751_v54 = vpop.xlane.xlu0 %750 }
 0x40b   : > { %1515 = vrcp.f32 %v751_v54 }
 0x40c   : > { %v888_v55 = vpop.xlane.xlu1 %887 }
 0x40d   : > { %1517 = vrcp.f32 %v888_v55 }
 0x40e   : > { %v885_v56 = vpop.xlane.xlu0 %884 }
 0x40f   : > { %v1512_v57 = vpop.eup %1511  ;;  %1519 = vrcp.f32 %v885_v56 }
 0x410   : > { %v624_v58 = vmul.f32 %v1512_v57, %v1496_v28  ;;  %v771_v63 = vpop.permute.xlu1 %770 }
 0x412   : > { %v1283_v59 = vpack.c.bf16 %v624_v58, %v624_v58  ;;  %v625_v60 = vpack.c.bf16 %v624_v58, %v623_v50  ;;  %v905_v12 = vpop.permute.xlu0 %904 }
 0x413   : > { %v1514_v61 = vpop.eup %1513 }
 0x414   : > { %1253 = vst.msk [vmem:[%s2086_s29 + $0xc] sm:$0xf] %vm498_vm5, %v1283_v59  ;;  %v758_v62 = vmul.f32 %v1514_v61, %v2065_v30  ;;  %1341 = vmatmul.mubr.msk.bf16.vlgmr.msra.gmra.mrb[8].mxu0 %vm467_vm4, %v625_v60 }
 0x415   : > { %v1516_v1 = vpop.eup %1515  ;;  %1351 = vmatpush3.bf16.msra.mxu0 %v771_v63  ;;  %1352 = vmatprep.mubr.msk.bf16.mxu0 %vm1733_vm0, %v1732_v0 }
 0x416   : > { %v1285_v2 = vpack.c.bf16 %v758_v62, %v758_v62  ;;  %v757_v3 = vmul.f32 %v1516_v1, %v2067_v31  ;;  %1362 = vmatprep.subr.bf16.mxu0 %v1732_v0  ;;  %v1488_v31 = vld [vmem:[#allocation8 + $0x8] sm:$0xff]  }
 0x417   : > { %v1518_v4 = vpop.eup %1517  ;;  %1371 = vmatpush3.bf16.msra.mxu1 %v1488_v31 }
 0x418   : > { %1259 = vst.msk [vmem:[%s2086_s29 + $0x14] sm:$0xf] %vm498_vm5, %v1285_v2  ;;  %v1284_v5 = vpack.c.bf16 %v757_v3, %v757_v3  ;;  %v892_v6 = vmul.f32 %v1518_v4, %v2071_v33  ;;  %v759_v10 = vpack.c.bf16 %v758_v62, %v757_v3 }
 0x419   : > { %v1520_v7 = vpop.eup %1519 }
 0x41a   : > { %1258 = vst.msk [vmem:[%s2086_s29 + $0x10] sm:$0xf] %vm498_vm5, %v1284_v5  ;;  %v1287_v8 = vpack.c.bf16 %v892_v6, %v892_v6  ;;  %v891_v9 = vmul.f32 %v1520_v7, %v2075_v35 }
 0x41c   : > { %1265 = vst.msk [vmem:[%s2086_s29 + $0x1c] sm:$0xf] %vm498_vm5, %v1287_v8  ;;  %v1286_v11 = vpack.c.bf16 %v891_v9, %v891_v9  ;;  %1353 = vmatmul.mubr.msk.bf16.vlgmr.msra.gmra.mrb[12].mxu0 %vm467_vm4, %v759_v10  ;;  %v893_v14 = vpack.c.bf16 %v892_v6, %v891_v9 }
 0x41d   : > { %1363 = vmatpush3.bf16.msra.mxu0 %v905_v12  ;;  %1364 = vmatprep.mubr.msk.bf16.mxu0 %vm1733_vm0, %v1732_v0 }
 0x41e   : > { %1264 = vst.msk [vmem:[%s2086_s29 + $0x18] sm:$0xf] %vm498_vm5, %v1286_v11 }
 0x424   : > { %1365 = vmatmul.mubr.msk.bf16.vlgmr.msra.gmra.mrb[16].mxu0 %vm467_vm4, %v893_v14 }
 0x4b2   : > { %v541_v15 = vpop.f32.mrb[4].mxu0 }
 0x4b3   : > { %v1330_v16 = vpop.f32.mrb[5].mxu0 }
 0x4b4   : > { %v544_v17 = vpop.f32.mrb[6].mxu0 }
 0x4b5   : > { %v548_v18 = vpack.c.bf16 %v544_v17, %v541_v15  ;;  %v1331_v19 = vpop.f32.mrb[7].mxu0 }
 0x4e7   : > { %v676_v20 = vpop.f32.mrb[8].mxu0 }
 0x4e8   : > { %v1342_v21 = vpop.f32.mrb[9].mxu0 }
 0x4e9   : > { %v679_v22 = vpop.f32.mrb[10].mxu0 }
 0x4ea   : > { %v683_v23 = vpack.c.bf16 %v679_v22, %v676_v20  ;;  %v1343_v24 = vpop.f32.mrb[11].mxu0 }
 0x4ec   : > { %953 = vrot.lane.b32.xlu1 %v683_v23, %s1745_s7 }
 0x4ef   : > { %v810_v25 = vpop.f32.mrb[12].mxu0 }
 0x4f0   : > { %v1354_v26 = vpop.f32.mrb[13].mxu0 }
 0x4f1   : > { %v813_v28 = vpop.f32.mrb[14].mxu0 }
 0x4f2   : > { %v817_v29 = vpack.c.bf16 %v813_v28, %v810_v25  ;;  %v1355_v30 = vpop.f32.mrb[15].mxu0 }
 0x4f4   : > { %956 = vrot.lane.b32.xlu0 %v817_v29, %s1746_s9  ;;  %s1613_s9 = scalar_lea.vmem %s1612_s14, 1024 }
 0x4f5   : > { %p1615_p5 = scmp.lt.s32.totalorder %s1613_s9, %s1607_s30 }
 0x4f7   : > { %v944_v32 = vpop.f32.mrb[16].mxu0  ;;  %p1616_p9 = por %p1615_p5, %p1614_p3 }
 0x4f8   : > { %v1366_v33 = vpop.f32.mrb[17].mxu0 }
 0x4f9   : > { %v947_v34 = vpop.f32.mrb[18].mxu0  ;;  %p1617_p11 = pnand %p1616_p9, %p1610_p10 }
 0x4fa   : > { %v951_v35 = vpack.c.bf16 %v947_v34, %v944_v32  ;;  %v1367_v36 = vpop.f32.mrb[19].mxu0 }
 0x4fc   : > { %959 = vrot.lane.b32.xlu1 %v951_v35, %s1747_s10 }
 0x55e   : > { %v954_v37 = vpop.permute.xlu1 %953 }
 0x55f   : > { %v963_v39 = vsel %vm415_vm2, %v548_v18, %v954_v37 }
 0x566   : > { %v957_v38 = vpop.permute.xlu0 %956 }
 0x567   : > { %v965_v0 = vsel %vm467_vm4, %v963_v39, %v957_v38 }
 0x56e   : > { %v960_v40 = vpop.permute.xlu1 %959 }
 0x56f   : > { %v968_v41 = vsel %vm966_vm6, %v965_v0, %v960_v40 }
 0x570   : > { %972 = vst.msk [vmem:[#allocation2] sm:$0xff] %vm360_vm1, %v968_v41 }
 0x577   : > { %v977_v42 = vld [vmem:[#allocation2] sm:$0xff] }
 0x578   : > { %1373 = vmatmul.mubr.msk.bf16.vlgmr.msra.gmra.mrb[16].mxu1 %vm360_vm1, %v977_v42 }
 0x579   : > { %1620 = shalt.err (!%p1617_p11)
}
 0x57a   : > { %s1621_s29 = scalar_lea.hbm %s2131_s16, 512  ;;  %s1625_s8 = scalar_lea.hbm %s2230_s6, 1024 }
 0x57b   : > { %p1622_p0 = scmp.ne.s32.totalorder %s2131_s16, %s1621_s29  ;;  %p1626_p6 = scmp.lt.u32.totalorder %s2131_s16, %s2230_s6 }
 0x57c   : > { %p1627_p7 = scmp.lt.u32.totalorder %s1625_s8, %s1621_s29  ;;  %p1629_p8 = scmp.lt.u32.totalorder %s1621_s29, %s2131_s16 }
 0x57d   : > { %p1623_p4 = pnand %p1622_p0, %p2249_p2 }
 0x57e   : > { %p1628_p12 = por %p1627_p7, %p1626_p6 }
 0x57f   : > { %p1624_p13 = pneg %p1623_p4 }
 0x580   : > { %p1630_p1 = por %p1629_p8, %p1628_p12 }
 0x582   : > { %p1631_p10 = pnand %p1630_p1, %p1624_p13 }
 0x584   : > { %1634 = shalt.err (!%p1631_p10)
}
 0x585   : > { %s1749_s30 = smov 4   ;;  %s1238_s14 = sshll.u32 %s1984_s28, 4  ;;  %v1267_v43 = vld [vmem:[%s2228_s4] ss:$0 sm:$0xff] }
 0x586   : > { %1387 = dma.vmem_to_hbm [thread:$0]  (%p2249_p2), %s2134_s20, 512, %s2131_s16, %s1053_s11, %s1742_s18, %s1742_s18, %s1749_s30  }
 0x587   : > { %s316_s29 = scalar_lea.vmem [#allocation9], %s1238_s14  ;;  %s1288_s8 = sshll.u32 %s1717_s24, 8 }
 0x588   : > { %s1066_s13 = sshll.u32 %s316_s29, 4  ;;  %s2173_s20 = scalar_lea.hbm %s2229_s5, %s1288_s8  ;;  %s2167_s13 = int_to_ptr.vmem [resolvable:$true] %s1066_s13 }
 0x589   : > { %s1048_s24 = scalar_lea.sflag [#allocation5], %s1984_s28  ;;  %s1635_s11 = scalar_lea.vmem %s2167_s13, 256 }
 0x58a   : > { %p1636_p3 = scmp.ne.s32.totalorder %s2167_s13, %s1635_s11  ;;  %s1750_s15 = smov [#allocation9]  }
 0x58b   : > { %s1639_s19 = sshll.u32 %s1750_s15, 4  ;;  %s1640_s19 = int_to_ptr.vmem [resolvable:$false] %s1639_s19 }
 0x58c   : > { %p1637_p5 = pnand %p1636_p3, %p2249_p2  ;;  %s1641_s30 = scalar_lea.vmem %s1640_s19, 512 }
 0x58d   : > { %p1642_p11 = scmp.lt.s32.totalorder %s2167_s13, %s1640_s19  ;;  %p1643_p0 = scmp.lt.s32.totalorder %s1641_s30, %s1635_s11 }
 0x58e   : > { %p1638_p9 = pneg %p1637_p5 }
 0x58f   : > { %p1644_p4 = por %p1643_p0, %p1642_p11 }
 0x591   : > { %p1645_p13 = pnand %p1644_p4, %p1638_p9 }
 0x64b   : > { %v1038_v44 = vpop.f32.mrb[16].mxu1 }
 0x64c   : > { %v1039_v45 = vadd.f32 %v1267_v43, %v1038_v44  ;;  %v1374_v46 = vpop.f32.mrb[17].mxu1 }
 0x64d   : > { %v1041_v13 = vpop.f32.mrb[18].mxu1 }
 0x64e   : > { %1045 = vst.msk [vmem:[%s316_s29] sm:$0xff] %vm360_vm1, %v1039_v45  ;;  %v1042_v47 = vadd.f32 %v1267_v43, %v1041_v13  ;;  %v1375_v48 = vpop.f32.mrb[19].mxu1 }
 0x650   : > { %1046 = vst.msk [vmem:[%s316_s29 + $0x8] sm:$0xff] %vm360_vm1, %v1042_v47 }
 0x651   : > { %1648 = shalt.err (!%p1645_p13)
}
 0x652   : > { %s1649_s14 = scalar_lea.hbm %s2173_s20, 256  ;;  %s1653_s29 = scalar_lea.hbm %s2229_s5, 512 }
 0x653   : > { %p1650_p6 = scmp.ne.s32.totalorder %s2173_s20, %s1649_s14  ;;  %p1654_p8 = scmp.lt.u32.totalorder %s2173_s20, %s2229_s5 }
 0x654   : > { %p1655_p1 = scmp.lt.u32.totalorder %s1653_s29, %s1649_s14  ;;  %p1657_p3 = scmp.lt.u32.totalorder %s1649_s14, %s2173_s20 }
 0x655   : > { %p1651_p7 = pnand %p1650_p6, %p2249_p2 }
 0x656   : > { %p1656_p10 = por %p1655_p1, %p1654_p8 }
 0x657   : > { %p1652_p12 = pneg %p1651_p7 }
 0x658   : > { %p1658_p5 = por %p1657_p3, %p1656_p10 }
 0x65a   : > { %p1659_p9 = pnand %p1658_p5, %p1652_p12 }
 0x65c   : > { %1662 = shalt.err (!%p1659_p9)
}
 0x65d   : > { %s1751_s16 = smov 128  }
 0x65e   : > { %1386 = dma.vmem_to_hbm [thread:$0]  (%p2249_p2), %s2167_s13, 256, %s2173_s20, %s1048_s24, %s1751_s16, %s1751_s16, %s1745_s7  }
 0x65f PF: > { %s2250_s11 = sld [smem:[#allocation16_spill]]  ;;  %s1100_s15 = sand.u32 1, %s1705_s21  }
 0x660   : > { %p2252_p0 = scmp.ge.s32.totalorder %s1725_s26, 2  ;;  %s1101_s19 = scalar_lea.sflag [#allocation5], %s1100_s15 }
 0x665   : > { %p2251_p11 = scmp.ne.s32.totalorder %s2250_s11, 0 }
 0x667   : > { %p1402_p4 = pnand %p2252_p0, %p2251_p11 }
 0x669   : > { %1696 = dma.done.wait (!%p1402_p4), %s1101_s19, 256  }
 0x66a   : > { %1698 = vsyncadd (!%p1402_p4), %s1101_s19, 4294967040  ;;  %s1110_s30 = scalar_lea.sflag [#allocation11], %s1100_s15 }
 0x66b   : > { %1700 = dma.done.wait (!%p1402_p4), %s1110_s30, 512  }
 0x66c   : > { %1702 = vsyncadd (!%p1402_p4), %s1110_s30, 4294966784  ;;  %s27_s26 = sadd.s32 1, %s1725_s26   ;;  %s2253_s21 = smov %s1709_s22 }
 0x66d   : > { %p24_p13 = scmp.ge.s32.totalorder %s27_s26, 4   ;;  %s2254_s22 = smov %s1713_s23 }
 0x66e   : > { %s2255_s23 = smov %s1935_s27  ;;  %s2256_s24 = smov %s1721_s25 }
 0x66f   : > { %s2257_s25 = smov %s2259_s12  ;;  %26 = sbr.rel (!%p24_p13) target bundleno = 9 (0x9), region = 120 }
 0x676   :  { %1115 = vsyncpa [#allocation4], 1 }
 0x677   :  { %1117 = vsyncpa [#allocation4 + $0x1], 1 }
 0x678   :  { %1118 = vsyncpa [#allocation7], 1 }
 0x679   :  { %1119 = vsyncpa [#allocation5], 1 }
 0x67a   :  { %1121 = vsyncpa [#allocation5 + $0x1], 1 }
 0x67b   :  { %1122 = vsyncpa [#allocation11], 1 }
 0x67c   :  { %1124 = vsyncpa [#allocation11 + $0x1], 1 }

</bundles_post_ra>
